<compile_context>
chip_gen: v7x
topology: tpu7x:2x2x1
jax: 0.10.0
libtpu: 0.0.40
codegen_flags: <defaults>
</compile_context>

<pallas_src>
import functools

import jax
import jax.numpy as jnp
from jax.experimental import pallas as pl
from jax.experimental.pallas import tpu as pltpu


# --------------------------------------------------------------------------- #
# Kernel A: packed lane-dense layout (C_in, Bt*L) -- arbitrary L fallback
# --------------------------------------------------------------------------- #
def resblock_kernel_packed(x_ref, mask_ref, w1_ref, b1_ref, w2_ref, b2_ref,
                           o_ref, *, fuse_taps):
    """x_ref: (C_in, N) packed activations, N = Bt*L lanes.
    mask_ref: (2, N) row0 zero where lane%L==0, row1 zero where lane%L==L-1."""
    x = x_ref[...]                        # (C_in, N) f32
    h = jnp.maximum(x, 0.0)               # ReLU
    n = h.shape[-1]

    prev_mask = mask_ref[0:1, :]          # (1, N)
    next_mask = mask_ref[1:2, :]          # (1, N)

    # Zero-padded shifts along the packed length axis; wrapped lanes are
    # exactly the ones zeroed by the periodic masks (tile width % L == 0 and
    # each tile starts on a batch boundary).
    h_prev = pltpu.roll(h, shift=1, axis=1) * prev_mask       # h[:, l-1]
    h_next = pltpu.roll(h, shift=n - 1, axis=1) * next_mask   # h[:, l+1]

    prec = jax.lax.Precision.HIGHEST

    if fuse_taps:
        h_stack = jnp.concatenate([h_prev, h, h_next], axis=0)   # (3*C_in, N)
        out1 = jnp.dot(w1_ref[...], h_stack, precision=prec,
                       preferred_element_type=jnp.float32)
    else:
        out1 = (jnp.dot(w1_ref[0], h_prev, precision=prec,
                        preferred_element_type=jnp.float32)
                + jnp.dot(w1_ref[1], h, precision=prec,
                          preferred_element_type=jnp.float32)
                + jnp.dot(w1_ref[2], h_next, precision=prec,
                          preferred_element_type=jnp.float32))
    out1 = jnp.maximum(out1 + b1_ref[...], 0.0)

    out2 = jnp.dot(w2_ref[...], out1, precision=prec,
                   preferred_element_type=jnp.float32) + b2_ref[...]

    o_ref[...] = (out2 + x).astype(o_ref.dtype)


# --------------------------------------------------------------------------- #
# Kernel B: native layout (Bt, C_in, L) -- L % 128 == 0 fast path (no wrapper
# transposes; per-batch 2D matmuls with L lanes)
# --------------------------------------------------------------------------- #
def resblock_kernel_native(x_ref, w1_ref, b1_ref, w2_ref, b2_ref, o_ref,
                           *, fuse_taps, bt):
    c_in, length = x_ref.shape[1], x_ref.shape[2]
    channel = b1_ref.shape[0]
    dt = o_ref.dtype

    # Edge masks for the k=3 conv (per-row lane index; hoisted out of the loop).
    lane = jax.lax.broadcasted_iota(jnp.int32, (c_in, length), 1)
    prev_mask = (lane != 0).astype(dt)
    next_mask = (lane != length - 1).astype(dt)

    # Hoist weight loads / bias broadcasts out of the unrolled batch loop.
    b1 = jnp.broadcast_to(b1_ref[...], (channel, length))
    b2 = jnp.broadcast_to(b2_ref[...], (c_in, length))
    w2 = w2_ref[...]
    prec = jax.lax.Precision.HIGHEST
    if fuse_taps:
        w1 = w1_ref[...]                                    # (channel, 3*C_in)
    else:
        w1_t0, w1_t1, w1_t2 = w1_ref[0], w1_ref[1], w1_ref[2]

    for b in range(bt):                                     # static unroll
        x = x_ref[b]                                        # (C_in, L)
        h = jnp.maximum(x, 0.0)
        h_prev = pltpu.roll(h, shift=1, axis=1) * prev_mask           # h[:, l-1]
        h_next = pltpu.roll(h, shift=length - 1, axis=1) * next_mask  # h[:, l+1]
        if fuse_taps:
            h_stack = jnp.concatenate([h_prev, h, h_next], axis=0)    # (3*C_in, L)
            out1 = jnp.dot(w1, h_stack, precision=prec,
                           preferred_element_type=jnp.float32)
        else:
            out1 = (jnp.dot(w1_t0, h_prev, precision=prec,
                            preferred_element_type=jnp.float32)
                    + jnp.dot(w1_t1, h, precision=prec,
                              preferred_element_type=jnp.float32)
                    + jnp.dot(w1_t2, h_next, precision=prec,
                              preferred_element_type=jnp.float32))
        out1 = jnp.maximum(out1 + b1, 0.0)
        out2 = jnp.dot(w2, out1, precision=prec,
                       preferred_element_type=jnp.float32) + b2
        o_ref[b] = (out2 + x).astype(dt)


# --------------------------------------------------------------------------- #
# Tiling helpers
# --------------------------------------------------------------------------- #
def _choose_batch_tile_packed(B, L, target_lanes=4096, max_lanes=8192):
    """Bt for the packed path: Bt | B and Bt*L % 128 == 0 (or Bt == B)."""
    legal = [d for d in range(1, B + 1)
             if B % d == 0 and ((d * L) % 128 == 0 or d == B)]
    fitting = [d for d in legal if d * L <= max_lanes] or [B]
    geq = [d for d in fitting if d * L >= target_lanes]
    bt = min(geq) if geq else max(fitting)
    if B // bt < 2:
        multi = [d for d in fitting if B // d >= 2 and d * L >= 1024]
        if multi:
            bt = max(multi)
    return bt


def _choose_batch_tile_native(B, C_in, L, target_bytes=2 << 20,
                              max_bytes=8 << 20, max_unroll=32):
    """Bt for the native path: Bt | B, tile ~0.5-8 MiB, unroll <= max_unroll."""
    per_b = C_in * L * 4
    divs = [d for d in range(1, B + 1) if B % d == 0 and d <= max_unroll]
    fitting = [d for d in divs if d * per_b <= max_bytes] or [1]
    geq = [d for d in fitting if d * per_b >= target_bytes]
    bt = min(geq) if geq else max(fitting)
    if B // bt < 2:
        multi = [d for d in fitting if B // d >= 2]
        if multi:
            bt = max(multi)
    return bt


def _prep_weights(w1, b1, w2, b2, fuse_taps):
    channel, C_in, _ = w1.shape
    if fuse_taps:
        w1p = jnp.concatenate([w1[:, :, 0], w1[:, :, 1], w1[:, :, 2]], axis=1)
        w1_spec = pl.BlockSpec((channel, 3 * C_in), lambda i: (0, 0))
    else:
        w1p = jnp.transpose(w1, (2, 0, 1))                  # (3, channel, C_in)
        w1_spec = pl.BlockSpec((3, channel, C_in), lambda i: (0, 0, 0))
    return (w1p, w1_spec, b1.reshape(channel, 1), w2[:, :, 0],
            b2.reshape(C_in, 1))


# --------------------------------------------------------------------------- #
# Wrappers
# --------------------------------------------------------------------------- #
def _resblock_native(x, w1, b1, w2, b2, fuse_taps):
    B, C_in, L = x.shape
    channel = w1.shape[0]
    bt = _choose_batch_tile_native(B, C_in, L)
    assert B % bt == 0
    grid = (B // bt,)

    w1p, w1_spec, b1p, w2p, b2p = _prep_weights(w1, b1, w2, b2, fuse_taps)

    tile_bytes = bt * C_in * L * 4
    vmem_limit = int(min(60 * 2**20, max(32 * 2**20, 6 * tile_bytes)))

    return pl.pallas_call(
        functools.partial(resblock_kernel_native, fuse_taps=fuse_taps, bt=bt),
        out_shape=jax.ShapeDtypeStruct((B, C_in, L), x.dtype),
        grid_spec=pltpu.PrefetchScalarGridSpec(
            num_scalar_prefetch=0,
            grid=grid,
            in_specs=[
                pl.BlockSpec((bt, C_in, L), lambda i: (i, 0, 0)),   # x
                w1_spec,                                            # conv1 weights
                pl.BlockSpec((channel, 1), lambda i: (0, 0)),       # b1
                pl.BlockSpec((C_in, channel), lambda i: (0, 0)),    # conv2 weight
                pl.BlockSpec((C_in, 1), lambda i: (0, 0)),          # b2
            ],
            out_specs=pl.BlockSpec((bt, C_in, L), lambda i: (i, 0, 0)),
        ),
        compiler_params=pltpu.CompilerParams(
            dimension_semantics=("parallel",),
            vmem_limit_bytes=vmem_limit),
    )(x, w1p, b1p, w2p, b2p)


def _resblock_packed(x, w1, b1, w2, b2, fuse_taps):
    B, C_in, L = x.shape
    channel = w1.shape[0]
    bt = _choose_batch_tile_packed(B, L)
    assert B % bt == 0
    n_tile = bt * L
    grid = (B // bt,)

    # Lane-dense packing: (B, C_in, L) -> (C_in, B*L).  Layout plumbing only.
    xp = jnp.transpose(x, (1, 0, 2)).reshape(C_in, B * L)

    # Periodic {0,1} edge masks (period L), grid-invariant -> resident in VMEM.
    lane = jnp.arange(n_tile) % L
    masks = jnp.stack([(lane != 0).astype(x.dtype),
                       (lane != L - 1).astype(x.dtype)], axis=0)  # (2, n_tile)

    w1p, w1_spec, b1p, w2p, b2p = _prep_weights(w1, b1, w2, b2, fuse_taps)

    est = 4 * n_tile * (4 * C_in + 6 * C_in + 2 * channel + 2 * C_in)
    vmem_limit = int(min(60 * 2**20, max(32 * 2**20, 2 * est)))

    out_p = pl.pallas_call(
        functools.partial(resblock_kernel_packed, fuse_taps=fuse_taps),
        out_shape=jax.ShapeDtypeStruct((C_in, B * L), x.dtype),
        grid_spec=pltpu.PrefetchScalarGridSpec(
            num_scalar_prefetch=0,
            grid=grid,
            in_specs=[
                pl.BlockSpec((C_in, n_tile), lambda i: (0, i)),    # packed x
                pl.BlockSpec((2, n_tile), lambda i: (0, 0)),       # edge masks
                w1_spec,                                           # conv1 weights
                pl.BlockSpec((channel, 1), lambda i: (0, 0)),      # b1
                pl.BlockSpec((C_in, channel), lambda i: (0, 0)),   # conv2 weight
                pl.BlockSpec((C_in, 1), lambda i: (0, 0)),         # b2
            ],
            out_specs=pl.BlockSpec((C_in, n_tile), lambda i: (0, i)),
        ),
        compiler_params=pltpu.CompilerParams(
            dimension_semantics=("parallel",),
            vmem_limit_bytes=vmem_limit),
    )(xp, masks, w1p, b1p, w2p, b2p)

    return out_p.reshape(C_in, B, L).transpose(1, 0, 2)


def resblock_pallas(x, w1, b1, w2, b2):
    """x: (B, C_in, L); w1: (channel, C_in, 3); b1: (channel,);
       w2: (C_in, channel, 1); b2: (C_in,).  Returns (B, C_in, L)."""
    B, C_in, L = x.shape
    channel = w1.shape[0]
    assert w1.shape == (channel, C_in, 3)
    assert b1.shape == (channel,)
    assert w2.shape == (C_in, channel, 1)
    assert b2.shape == (C_in,)

    # Fuse the three tap matmuls into one K=3*C_in matmul when sublane-aligned.
    fuse_taps = (C_in % 8 == 0)

    if L % 128 == 0:
        # Lane-dense in native layout: skip the wrapper pack/unpack HBM passes.
        return _resblock_native(x, w1, b1, w2, b2, fuse_taps)
    return _resblock_packed(x, w1, b1, w2, b2, fuse_taps)


# --------------------------------------------------------------------------- #
# Pure-JAX reference (PyTorch semantics) + self-test
# --------------------------------------------------------------------------- #
def resblock_ref(x, w1, b1, w2, b2):
    h = jnp.maximum(x, 0.0)
    out1 = jax.lax.conv_general_dilated(
        h, w1, window_strides=(1,), padding=((1, 1),),
        dimension_numbers=("NCH", "OIH", "NCH"),
        precision=jax.lax.Precision.HIGHEST) + b1[None, :, None]
    out1 = jnp.maximum(out1, 0.0)
    out2 = jax.lax.conv_general_dilated(
        out1, w2, window_strides=(1,), padding=((0, 0),),
        dimension_numbers=("NCH", "OIH", "NCH"),
        precision=jax.lax.Precision.HIGHEST) + b2[None, :, None]
    return out2 + x


def _run_case(key, B, C_in, channel, L):
    kx, k1, k2, k3, k4 = jax.random.split(key, 5)
    x = jax.random.normal(kx, (B, C_in, L), dtype=jnp.float32)
    w1 = jax.random.normal(k1, (channel, C_in, 3), dtype=jnp.float32) * 0.2
    b1 = jax.random.normal(k2, (channel,), dtype=jnp.float32) * 0.1
    w2 = jax.random.normal(k3, (C_in, channel, 1), dtype=jnp.float32) * 0.2
    b2 = jax.random.normal(k4, (C_in,), dtype=jnp.float32) * 0.1

    out = jax.block_until_ready(resblock_pallas(x, w1, b1, w2, b2))
    ref = resblock_ref(x, w1, b1, w2, b2)
    assert out.shape == (B, C_in, L)
    err = jnp.max(jnp.abs(out - ref))
    assert jnp.allclose(out, ref, atol=1e-4, rtol=1e-4), f"max abs err = {err}"


if __name__ == "__main__":
    root = jax.random.PRNGKey(0)
    k0, k1, k2, k3 = jax.random.split(root, 4)

    # Small shapes consistent with the module: packed path, unfused taps.
    _run_case(k0, B=2, C_in=4, channel=8, L=16)

    # Native-layout path, unfused taps (C_in not sublane-aligned), L=128.
    _run_case(k1, B=4, C_in=4, channel=8, L=128)

    # Native-layout path, fused K=3*C_in matmul, 2-step "parallel" grid.
    _run_case(k2, B=16, C_in=32, channel=64, L=256)

    # Packed path, fused taps (L not a multiple of 128).
    _run_case(k3, B=8, C_in=16, channel=32, L=96)

    print("KERNEL_OK")
</pallas_src>

<mosaic_0001>
module attributes {stable_mosaic.version = 11 : i64} {
  func.func @resblock_kernel_packed(%arg0: i32, %arg1: memref<4x32xf32, #tpu.memory_space<vmem>>, %arg2: memref<2x32xf32, #tpu.memory_space<vmem>>, %arg3: memref<3x8x4xf32, #tpu.memory_space<vmem>>, %arg4: memref<8x1xf32, #tpu.memory_space<vmem>>, %arg5: memref<4x8xf32, #tpu.memory_space<vmem>>, %arg6: memref<4x1xf32, #tpu.memory_space<vmem>>, %arg7: memref<4x32xf32, #tpu.memory_space<vmem>>) attributes {dimension_semantics = [#tpu.dimension_semantics<parallel>], iteration_bounds = array<i64: 1>, scalar_prefetch = 0 : i64, scratch_operands = 0 : i64, tpu.core_type = #tpu.core_type<tc>, window_params = [{transform_indices = @transform_0, window_bounds = array<i64: 4, 32>}, {pipeline_mode = #tpu.pipeline_mode<synchronous>, transform_indices = @transform_1, window_bounds = array<i64: 2, 32>}, {pipeline_mode = #tpu.pipeline_mode<synchronous>, transform_indices = @transform_2, window_bounds = array<i64: 3, 8, 4>}, {pipeline_mode = #tpu.pipeline_mode<synchronous>, transform_indices = @transform_3, window_bounds = array<i64: 8, 1>}, {pipeline_mode = #tpu.pipeline_mode<synchronous>, transform_indices = @transform_4, window_bounds = array<i64: 4, 8>}, {pipeline_mode = #tpu.pipeline_mode<synchronous>, transform_indices = @transform_5, window_bounds = array<i64: 4, 1>}, {transform_indices = @transform_6, window_bounds = array<i64: 4, 32>}]} {
    %c0 = arith.constant 0 : index
    %c0_0 = arith.constant 0 : index
    %0 = vector.load %arg1[%c0, %c0_0] : memref<4x32xf32, #tpu.memory_space<vmem>>, vector<4x32xf32>
    %cst = arith.constant 0.000000e+00 : f32
    %1 = vector.broadcast %cst : f32 to vector<4x32xf32>
    %2 = arith.maximumf %0, %1 : vector<4x32xf32>
    %c0_1 = arith.constant 0 : index
    %c0_2 = arith.constant 0 : index
    %3 = vector.load %arg2[%c0_1, %c0_2] : memref<2x32xf32, #tpu.memory_space<vmem>>, vector<1x32xf32>
    %c1 = arith.constant 1 : index
    %c0_3 = arith.constant 0 : index
    %4 = vector.load %arg2[%c1, %c0_3] : memref<2x32xf32, #tpu.memory_space<vmem>>, vector<1x32xf32>
    %c1_i32 = arith.constant 1 : i32
    %5 = tpu.dynamic_rotate %2 by %c1_i32 dim 1 : vector<4x32xf32>, i32 -> vector<4x32xf32>
    %6 = vector.broadcast %3 : vector<1x32xf32> to vector<4x32xf32>
    %7 = arith.mulf %5, %6 : vector<4x32xf32>
    %c31_i32 = arith.constant 31 : i32
    %8 = tpu.dynamic_rotate %2 by %c31_i32 dim 1 : vector<4x32xf32>, i32 -> vector<4x32xf32>
    %9 = vector.broadcast %4 : vector<1x32xf32> to vector<4x32xf32>
    %10 = arith.mulf %8, %9 : vector<4x32xf32>
    %c0_4 = arith.constant 0 : index
    %c0_5 = arith.constant 0 : index
    %c0_6 = arith.constant 0 : index
    %11 = vector.load %arg3[%c0_4, %c0_5, %c0_6] : memref<3x8x4xf32, #tpu.memory_space<vmem>>, vector<1x8x4xf32>
    %12 = vector.shape_cast %11 : vector<1x8x4xf32> to vector<8x4xf32>
    %cst_7 = arith.constant dense<0.000000e+00> : vector<8x32xf32>
    %13 = tpu.matmul %12, %7, %cst_7 {dimension_numbers = #tpu.dot_dimension_numbers<[1], [0], [0], [1], [0, 0, 1, 1], [], []>, precision = #tpu.contract_precision<fp32>} : vector<8x4xf32>, vector<4x32xf32>, vector<8x32xf32> -> vector<8x32xf32>
    %c1_8 = arith.constant 1 : index
    %c0_9 = arith.constant 0 : index
    %c0_10 = arith.constant 0 : index
    %14 = vector.load %arg3[%c1_8, %c0_9, %c0_10] : memref<3x8x4xf32, #tpu.memory_space<vmem>>, vector<1x8x4xf32>
    %15 = vector.shape_cast %14 : vector<1x8x4xf32> to vector<8x4xf32>
    %cst_11 = arith.constant dense<0.000000e+00> : vector<8x32xf32>
    %16 = tpu.matmul %15, %2, %cst_11 {dimension_numbers = #tpu.dot_dimension_numbers<[1], [0], [0], [1], [0, 0, 1, 1], [], []>, precision = #tpu.contract_precision<fp32>} : vector<8x4xf32>, vector<4x32xf32>, vector<8x32xf32> -> vector<8x32xf32>
    %17 = arith.addf %13, %16 : vector<8x32xf32>
    %c2 = arith.constant 2 : index
    %c0_12 = arith.constant 0 : index
    %c0_13 = arith.constant 0 : index
    %18 = vector.load %arg3[%c2, %c0_12, %c0_13] : memref<3x8x4xf32, #tpu.memory_space<vmem>>, vector<1x8x4xf32>
    %19 = vector.shape_cast %18 : vector<1x8x4xf32> to vector<8x4xf32>
    %cst_14 = arith.constant dense<0.000000e+00> : vector<8x32xf32>
    %20 = tpu.matmul %19, %10, %cst_14 {dimension_numbers = #tpu.dot_dimension_numbers<[1], [0], [0], [1], [0, 0, 1, 1], [], []>, precision = #tpu.contract_precision<fp32>} : vector<8x4xf32>, vector<4x32xf32>, vector<8x32xf32> -> vector<8x32xf32>
    %21 = arith.addf %17, %20 : vector<8x32xf32>
    %c0_15 = arith.constant 0 : index
    %c0_16 = arith.constant 0 : index
    %22 = vector.load %arg4[%c0_15, %c0_16] : memref<8x1xf32, #tpu.memory_space<vmem>>, vector<8x1xf32>
    %23 = vector.broadcast %22 : vector<8x1xf32> to vector<8x32xf32>
    %24 = arith.addf %21, %23 : vector<8x32xf32>
    %cst_17 = arith.constant 0.000000e+00 : f32
    %25 = vector.broadcast %cst_17 : f32 to vector<8x32xf32>
    %26 = arith.maximumf %24, %25 : vector<8x32xf32>
    %c0_18 = arith.constant 0 : index
    %c0_19 = arith.constant 0 : index
    %27 = vector.load %arg5[%c0_18, %c0_19] : memref<4x8xf32, #tpu.memory_space<vmem>>, vector<4x8xf32>
    %cst_20 = arith.constant dense<0.000000e+00> : vector<4x32xf32>
    %28 = tpu.matmul %27, %26, %cst_20 {dimension_numbers = #tpu.dot_dimension_numbers<[1], [0], [0], [1], [0, 0, 1, 1], [], []>, precision = #tpu.contract_precision<fp32>} : vector<4x8xf32>, vector<8x32xf32>, vector<4x32xf32> -> vector<4x32xf32>
    %c0_21 = arith.constant 0 : index
    %c0_22 = arith.constant 0 : index
    %29 = vector.load %arg6[%c0_21, %c0_22] : memref<4x1xf32, #tpu.memory_space<vmem>>, vector<4x1xf32>
    %30 = vector.broadcast %29 : vector<4x1xf32> to vector<4x32xf32>
    %31 = arith.addf %28, %30 : vector<4x32xf32>
    %32 = arith.addf %31, %0 : vector<4x32xf32>
    %c0_23 = arith.constant 0 : index
    %c0_24 = arith.constant 0 : index
    %33 = vector.load %arg7[%c0_23, %c0_24] : memref<4x32xf32, #tpu.memory_space<vmem>>, vector<4x32xf32>
    tpu.vector_store %arg7[%c0_23, %c0_24], %32 {strides = array<i32>} : memref<4x32xf32, #tpu.memory_space<vmem>>, vector<4x32xf32>,
    return
  }
  func.func @transform_0(%arg0: i32) -> (i32, i32) {
    %c0_i32 = arith.constant 0 : i32
    %c0_i32_0 = arith.constant 0 : i32
    return %c0_i32, %arg0 : i32, i32
  }
  func.func @transform_1(%arg0: i32) -> (i32, i32) {
    %c0_i32 = arith.constant 0 : i32
    %c0_i32_0 = arith.constant 0 : i32
    %c0_i32_1 = arith.constant 0 : i32
    return %c0_i32, %c0_i32_0 : i32, i32
  }
  func.func @transform_2(%arg0: i32) -> (i32, i32, i32) {
    %c0_i32 = arith.constant 0 : i32
    %c0_i32_0 = arith.constant 0 : i32
    %c0_i32_1 = arith.constant 0 : i32
    %c0_i32_2 = arith.constant 0 : i32
    return %c0_i32, %c0_i32_0, %c0_i32_1 : i32, i32, i32
  }
  func.func @transform_3(%arg0: i32) -> (i32, i32) {
    %c0_i32 = arith.constant 0 : i32
    %c0_i32_0 = arith.constant 0 : i32
    %c0_i32_1 = arith.constant 0 : i32
    return %c0_i32, %c0_i32_0 : i32, i32
  }
  func.func @transform_4(%arg0: i32) -> (i32, i32) {
    %c0_i32 = arith.constant 0 : i32
    %c0_i32_0 = arith.constant 0 : i32
    %c0_i32_1 = arith.constant 0 : i32
    return %c0_i32, %c0_i32_0 : i32, i32
  }
  func.func @transform_5(%arg0: i32) -> (i32, i32) {
    %c0_i32 = arith.constant 0 : i32
    %c0_i32_0 = arith.constant 0 : i32
    %c0_i32_1 = arith.constant 0 : i32
    return %c0_i32, %c0_i32_0 : i32, i32
  }
  func.func @transform_6(%arg0: i32) -> (i32, i32) {
    %c0_i32 = arith.constant 0 : i32
    %c0_i32_0 = arith.constant 0 : i32
    return %c0_i32, %arg0 : i32, i32
  }
}

</mosaic_0001>

<bundles_post_ra>
// kernel: tpu_custom_call.1
= control target key start
LH: loop header
LB: loop body
LE: loop exit
PB: predicated region body
PF: predicated region fallthrough
CT: control target
= control target key end

     0   :  { %s2110_s25 = smov 31   ;;  %s2292_s0 = inlined_call_operand.vmem [shape: f32[4,32], index: 0, kind: input, shape index: {}]   ;;  %s2293_s1 = inlined_call_operand.vmem [shape: f32[2,32], index: 1, kind: input, shape index: {}]   ;;  %s2294_s2 = inlined_call_operand.vmem [shape: f32[3,8,4], index: 2, kind: input, shape index: {}]   ;;  %s2295_s3 = inlined_call_operand.vmem [shape: f32[8,1], index: 3, kind: input, shape index: {}]   ;;  %s2296_s4 = inlined_call_operand.vmem [shape: f32[4,8], index: 4, kind: input, shape index: {}]   ;;  %s2297_s5 = inlined_call_operand.vmem [shape: f32[4,1], index: 5, kind: input, shape index: {}]   ;;  %s2298_s6 = inlined_call_operand.hbm [shape: f32[4,32], index: 6, kind: output, shape index: {}]  }
   0x1   :  { %v2157_v0 = vld [vmem:[%s2292_s0] sm:$0xf] }
   0x2   :  { %v1903_v1 = vld [vmem:[%s2293_s1] ss:$0 sm:$0xff]  ;;  %v25_v2 = vmax.f32 %v2157_v0, 0.0  ;;  %v1904_v3 = vld [vmem:[%s2293_s1 + $0x1] ss:$0 sm:$0xff] }
   0x3   :  { %40 = vrot.lane.b32.xlu1 %v1903_v1, %s2110_s25 }
   0x4   :  { %11 = vsyncpa [#allocation3], 0  ;;  %s2111_s28 = smov 32   ;;  %s2112_s29 = smov 1   ;;  %vm60_vm0 = vcmask 1043456   ;;  %v1905_v4 = vld [vmem:[%s2294_s2 + $0x8] sm:$0xff] }
   0x5   :  { %29 = vrot.lane.b32.xlu0 %v25_v2, %s2111_s28  ;;  %vm56_vm1 = vcmask 31744   ;;  %v2113_v5 = vmov 0.0   ;;  %v62_v6 = vsel %vm60_vm0, %v25_v2, 0  ;;  %vm2114_vm2 = vmmov 0   ;;  %s2115_s1 = smov 127   ;;  %s2116_s7 = smov 97  }
   0x6   :  { %1955 = vmatprep.subr.mxu0 %v2113_v5  ;;  %1957 = vmatprep.mubr.msk.f32.mxu0 %vm2114_vm2, %v2113_v5  ;;  %v58_v7 = vsel %vm56_vm1, %v1905_v4, 0  ;;  %v65_v8 = vand.u32 4294901760, %v62_v6  ;;  %vm28_vm3 = vcmask 1047808   ;;  %v1421_v26 = vld [vmem:[%s2295_s3] sm:$0xff]  ;;  %v2117_v27 = vmov 0   ;;  %v1906_v47 = vld [vmem:[%s2294_s2 + $0x10] sm:$0xff] }
   0x7   :  { %49 = vrot.lane.b32.xlu1 %v1904_v3, %s2112_s29  ;;  %v130_v9 = vand.u32 4294901760, %v58_v7  ;;  %1960 = vmatprep.subr.mxu1 %v2113_v5  ;;  %v53_v28 = vld [vmem:[%s2294_s2] sm:$0xff]  ;;  %v970_v51 = vsel %vm56_vm1, %v1906_v47, 0  ;;  %vm1436_vm4 = vcmask 64512   ;;  %vm1887_vm5 = vcmask 257024  }
   0x8   :  { %1962 = vmatprep.mubr.msk.f32.mxu1 %vm2114_vm2, %v2113_v5  ;;  %1956 = vmatpush3.msra.mxu0 %v65_v8  ;;  %v142_v11 = vsub.f32 %v62_v6, %v65_v8  ;;  %v514_v30 = vsel %vm56_vm1, %v53_v28, 0  ;;  %v2213_v53 = vand.u32 4294901760, %v970_v51  ;;  %v1429_v28 = vld [vmem:[%s2296_s4] sm:$0xf]  ;;  %s2118_s4 = smov [#allocation2]  }
   0x9   :  { %v131_v10 = vsub.f32 %v58_v7, %v130_v9  ;;  %1965 = vmatprep.subr.mxu0 %v2113_v5  ;;  %2084 = vset.pattern.permute.xlu0 %v2117_v27  ;;  %v2204_v35 = vand.u32 4294901760, %v514_v30  ;;  %s1895_s15 = sshll.u32 %s2118_s4, 4  ;;  %s1896_s15 = int_to_ptr.vmem [resolvable:$true] %s1895_s15 }
   0xa   :  { %v143_v13 = vand.u32 4294901760, %v142_v11  ;;  %2085 = vset.pattern.permute.xlu1 %v2117_v27  ;;  %v1041_v60 = vsub.f32 %v970_v51, %v2213_v53  ;;  %s2086_s16 = scalar_lea.vmem %s1896_s15, 64  ;;  %p2091_p1 = scmp.lt.s32.totalorder %s1896_s15, %s1896_s15 }
   0xb   :  { %v132_v12 = vand.u32 4294901760, %v131_v10  ;;  %v585_v42 = vsub.f32 %v514_v30, %v2204_v35  ;;  %p2087_p0 = scmp.ne.s32.totalorder %s1896_s15, %s2086_s16  ;;  %p2092_p2 = scmp.lt.s32.totalorder %s2086_s16, %s2086_s16 }
   0xc   :  { %v144_v16 = vsub.f32 %v142_v11, %v143_v13  ;;  %v1042_v1 = vand.u32 4294901760, %v1041_v60 }
   0xd   :  { %v133_v15 = vsub.f32 %v131_v10, %v132_v12  ;;  %v586_v50 = vand.u32 4294901760, %v585_v42  ;;  %p2093_p3 = por %p2092_p2, %p2091_p1 }
   0xe   :  { %v145_v19 = vand.u32 4294901760, %v144_v16  ;;  %v1043_v6 = vsub.f32 %v1041_v60, %v1042_v1 }
   0xf   :  { %v134_v18 = vand.u32 4294901760, %v133_v15  ;;  %v587_v52 = vsub.f32 %v585_v42, %v586_v50  ;;  %p2094_p4 = pnand %p2093_p3, %p2087_p0 }
  0x10   :  { %1961 = vmatpush3.msra.mxu1 %v145_v19 }
  0x11   :  { %1958 = vmatmul.mubr.f32.vlgmr.msra.gmra.mrb[0].mxu0 %v134_v18  ;;  %1963 = vmatmul.mubr.f32.vlgmr.msra.gmra.mrb[0].mxu1 %v130_v9  ;;  %v588_v58 = vand.u32 4294901760, %v587_v52 }
  0x12   :  { %1966 = vmatpush3.msra.mxu0 %v142_v11  ;;  %1967 = vmatprep.mubr.msk.f32.mxu0 %vm2114_vm2, %v2113_v5  ;;  %v1430_v11 = vld [vmem:[%s2297_s5] sm:$0xf] }
  0x13   :  { %1975 = vmatprep.subr.mxu0 %v2113_v5  ;;  %1970 = vmatprep.subr.mxu1 %v2113_v5 }
  0x14   :  { %1972 = vmatprep.mubr.msk.f32.mxu1 %vm2114_vm2, %v2113_v5  ;;  %1971 = vmatpush3.msra.mxu1 %v65_v8 }
  0x15   :  { %1968 = vmatmul.mubr.f32.vlgmr.msra.gmra.mrb[2].mxu0 %v131_v10  ;;  %1973 = vmatmul.mubr.f32.vlgmr.msra.gmra.mrb[2].mxu1 %v132_v12 }
  0x16   :  { %1976 = vmatpush3.msra.mxu0 %v143_v13  ;;  %1977 = vmatprep.mubr.msk.f32.mxu0 %vm2114_vm2, %v2113_v5 }
  0x17   :  { %1985 = vmatprep.subr.mxu0 %v2113_v5  ;;  %1980 = vmatprep.subr.mxu1 %v2113_v5 }
  0x18   :  { %1982 = vmatprep.mubr.msk.f32.mxu1 %vm2114_vm2, %v2113_v5  ;;  %1981 = vmatpush3.msra.mxu1 %v65_v8  ;;  %v1044_v8 = vand.u32 4294901760, %v1043_v6 }
  0x19   :  { %1978 = vmatmul.mubr.f32.vlgmr.msra.gmra.mrb[4].mxu0 %v130_v9  ;;  %1990 = vmatprep.subr.mxu1 %v2113_v5 }
  0x1a   :  { %1987 = vmatprep.mubr.msk.f32.mxu0 %vm2114_vm2, %v2113_v5  ;;  %1983 = vmatmul.mubr.f32.vlgmr.msra.gmra.mrb[4].mxu1 %v130_v9 }
  0x1b   :  { %1992 = vmatprep.mubr.msk.f32.mxu1 %vm2114_vm2, %v2113_v5 }
  0x75   :  { %v41_v20 = vpop.permute.xlu1 %40 }
  0x77   :  { %v30_v14 = vpop.permute.xlu0 %29 }
  0x78   :  { %v31_v17 = vsel %vm28_vm3, %v30_v14, %v25_v2 }
  0x79   :  { %32 = vrot.lane.b32.xlu0 %v31_v17, %s2111_s28  ;;  %v50_v21 = vpop.permute.xlu1 %49 }
  0xe4   :  { %v136_v29 = vpop.f32.mrb[0].mxu0  ;;  %v212_v32 = vpop.f32.mrb[0].mxu1 }
  0xe5   :  { %v1959_v31 = vpop.f32.mrb[1].mxu0  ;;  %v213_v33 = vadd.f32 %v212_v32, %v136_v29  ;;  %v1964_v34 = vpop.f32.mrb[1].mxu1 }
  0xe6   :  { %v1438_v34 = vsel %vm1436_vm4, %v1429_v28, 0 }
  0xe8   :  { %v286_v36 = vpop.f32.mrb[2].mxu0  ;;  %v360_v39 = vpop.f32.mrb[2].mxu1 }
  0xe9   :  { %v287_v37 = vadd.f32 %v286_v36, %v213_v33  ;;  %v1969_v38 = vpop.f32.mrb[3].mxu0  ;;  %v1974_v41 = vpop.f32.mrb[3].mxu1 }
  0xeb   :  { %v33_v22 = vpop.permute.xlu0 %32  ;;  %v361_v40 = vadd.f32 %v360_v39, %v287_v37  ;;  %v1506_v37 = vand.u32 4294901760, %v1438_v34 }
  0xec   :  { %v34_v23 = vsel %vm28_vm3, %v33_v22, %v25_v2  ;;  %v434_v43 = vpop.f32.mrb[4].mxu0 }
  0xed   :  { %v43_v24 = vmul.f32 %v41_v20, %v34_v23  ;;  %v52_v25 = vmul.f32 %v50_v21, %v34_v23  ;;  %v435_v44 = vadd.f32 %v434_v43, %v361_v40  ;;  %v1979_v45 = vpop.f32.mrb[5].mxu0  ;;  %v506_v46 = vpop.f32.mrb[4].mxu1 }
  0xee   :  { %v1984_v49 = vpop.f32.mrb[5].mxu1 }
  0xef   :  { %967 = vrot.lane.b32.xlu1 %v52_v25, %s2115_s1  ;;  %511 = vrot.lane.b32.xlu0 %v43_v24, %s2116_s7  ;;  %v2210_v48 = vadd.f32 %v506_v46, %v435_v44  ;;  %v1507_v44 = vsub.f32 %v1438_v34, %v1506_v37 }
  0xf1   :  { %v1508_v49 = vand.u32 4294901760, %v1507_v44 }
  0xf3   :  { %1424 = vperm.xlu0 %2084, %v1421_v26   ;;  %1433 = vperm.xlu1 %2085, %v1430_v11  }
 0x161   :  { %v968_v54 = vpop.permute.xlu1 %967  ;;  %v512_v55 = vpop.permute.xlu0 %511 }
 0x162   :  { %v972_v56 = vsel %vm60_vm0, %v968_v54, 0  ;;  %v516_v57 = vsel %vm60_vm0, %v512_v55, 0  ;;  %v1509_v54 = vsub.f32 %v1507_v44, %v1508_v49 }
 0x163   :  { %v519_v59 = vand.u32 4294901760, %v516_v57  ;;  %v975_v61 = vand.u32 4294901760, %v972_v56 }
 0x165   :  { %v596_v62 = vsub.f32 %v516_v57, %v519_v59  ;;  %1986 = vmatpush3.msra.mxu0 %v519_v59  ;;  %v1052_v2 = vsub.f32 %v972_v56, %v975_v61  ;;  %v1510_v57 = vand.u32 4294901760, %v1509_v54 }
 0x166   :  { %1988 = vmatmul.mubr.f32.vlgmr.msra.gmra.mrb[6].mxu0 %v588_v58  ;;  %1995 = vmatprep.subr.mxu0 %v2113_v5 }
 0x167   :  { %v597_v63 = vand.u32 4294901760, %v596_v62  ;;  %1996 = vmatpush3.msra.mxu0 %v596_v62  ;;  %1997 = vmatprep.mubr.msk.f32.mxu0 %vm2114_vm2, %v2113_v5  ;;  %v1053_v7 = vand.u32 4294901760, %v1052_v2 }
 0x168   :  { %2005 = vmatprep.subr.mxu0 %v2113_v5 }
 0x169   :  { %v598_v3 = vsub.f32 %v596_v62, %v597_v63  ;;  %v1054_v9 = vsub.f32 %v1052_v2, %v1053_v7 }
 0x16a   :  { %1998 = vmatmul.mubr.f32.vlgmr.msra.gmra.mrb[8].mxu0 %v585_v42 }
 0x16b   :  { %v599_v4 = vand.u32 4294901760, %v598_v3  ;;  %2006 = vmatpush3.msra.mxu0 %v597_v63  ;;  %2007 = vmatprep.mubr.msk.f32.mxu0 %vm2114_vm2, %v2113_v5  ;;  %v1055_v10 = vand.u32 4294901760, %v1054_v9 }
 0x16c   :  { %2015 = vmatprep.subr.mxu0 %v2113_v5 }
 0x16d   :  { %1991 = vmatpush3.msra.mxu1 %v599_v4 }
 0x16e   :  { %1993 = vmatmul.mubr.f32.vlgmr.msra.gmra.mrb[6].mxu1 %v2204_v35  ;;  %2000 = vmatprep.subr.mxu1 %v2113_v5 }
 0x16f   :  { %2008 = vmatmul.mubr.f32.vlgmr.msra.gmra.mrb[10].mxu0 %v2204_v35  ;;  %2001 = vmatpush3.msra.mxu1 %v519_v59 }
 0x170   :  { %2016 = vmatpush3.msra.mxu0 %v975_v61  ;;  %2002 = vmatprep.mubr.msk.f32.mxu1 %vm2114_vm2, %v2113_v5 }
 0x171   :  { %2010 = vmatprep.subr.mxu1 %v2113_v5  ;;  %2017 = vmatprep.mubr.msk.f32.mxu0 %vm2114_vm2, %v2113_v5 }
 0x172   :  { %2025 = vmatprep.subr.mxu0 %v2113_v5  ;;  %2003 = vmatmul.mubr.f32.vlgmr.msra.gmra.mrb[8].mxu1 %v586_v50  ;;  %v1425_v52 = vpop.permute.xlu0 %1424 }
 0x173   :  { %2011 = vmatpush3.msra.mxu1 %v519_v59  ;;  %2018 = vmatmul.mubr.f32.vlgmr.msra.gmra.mrb[12].mxu0 %v1044_v8 }
 0x174   :  { %2026 = vmatpush3.msra.mxu0 %v1052_v2  ;;  %2012 = vmatprep.mubr.msk.f32.mxu1 %vm2114_vm2, %v2113_v5  ;;  %v1434_v2 = vpop.permute.xlu1 %1433 }
 0x175   :  { %2020 = vmatprep.subr.mxu1 %v2113_v5  ;;  %2027 = vmatprep.mubr.msk.f32.mxu0 %vm2114_vm2, %v2113_v5 }
 0x176   :  { %2035 = vmatprep.subr.mxu0 %v2113_v5  ;;  %2013 = vmatmul.mubr.f32.vlgmr.msra.gmra.mrb[10].mxu1 %v2204_v35 }
 0x177   :  { %2021 = vmatpush3.msra.mxu1 %v1055_v10  ;;  %2028 = vmatmul.mubr.f32.vlgmr.msra.gmra.mrb[14].mxu0 %v1041_v60 }
 0x178   :  { %2036 = vmatpush3.msra.mxu0 %v1053_v7  ;;  %2022 = vmatprep.mubr.msk.f32.mxu1 %vm2114_vm2, %v2113_v5 }
 0x179   :  { %2030 = vmatprep.subr.mxu1 %v2113_v5  ;;  %2037 = vmatprep.mubr.msk.f32.mxu0 %vm2114_vm2, %v2113_v5 }
 0x17a   :  { %2023 = vmatmul.mubr.f32.vlgmr.msra.gmra.mrb[12].mxu1 %v2213_v53  ;;  %2045 = vmatprep.subr.mxu0 %v2113_v5 }
 0x17b   :  { %2031 = vmatpush3.msra.mxu1 %v975_v61  ;;  %2032 = vmatprep.mubr.msk.f32.mxu1 %vm2114_vm2, %v2113_v5 }
 0x17c   :  { %2040 = vmatprep.subr.mxu1 %v2113_v5  ;;  %2038 = vmatmul.mubr.f32.vlgmr.msra.gmra.mrb[16].mxu0 %v2213_v53 }
 0x17d   :  { %2047 = vmatprep.mubr.msk.f32.mxu0 %vm2114_vm2, %v2113_v5 }
 0x17e   :  { %2033 = vmatmul.mubr.f32.vlgmr.msra.gmra.mrb[14].mxu1 %v1042_v1 }
 0x17f   :  { %2041 = vmatpush3.msra.mxu1 %v975_v61  ;;  %2042 = vmatprep.mubr.msk.f32.mxu1 %vm2114_vm2, %v2113_v5 }
 0x180   :  { %2050 = vmatprep.subr.mxu1 %v2113_v5 }
 0x182   :  { %2043 = vmatmul.mubr.f32.vlgmr.msra.gmra.mrb[16].mxu1 %v2213_v53 }
 0x183   :  { %2052 = vmatprep.mubr.msk.f32.mxu1 %vm2114_vm2, %v2113_v5 }
 0x239   :  { %v590_v12 = vpop.f32.mrb[6].mxu0 }
 0x23a   :  { %v591_v13 = vadd.f32 %v590_v12, %v2210_v48  ;;  %v1989_v14 = vpop.f32.mrb[7].mxu0 }
 0x23d   :  { %v740_v15 = vpop.f32.mrb[8].mxu0 }
 0x23e   :  { %v1999_v16 = vpop.f32.mrb[9].mxu0 }
 0x241   :  { %v666_v17 = vpop.f32.mrb[6].mxu1 }
 0x242   :  { %v667_v18 = vadd.f32 %v666_v17, %v591_v13  ;;  %v1994_v19 = vpop.f32.mrb[7].mxu1  ;;  %v888_v20 = vpop.f32.mrb[10].mxu0 }
 0x243   :  { %v2009_v21 = vpop.f32.mrb[11].mxu0 }
 0x244   :  { %v741_v22 = vadd.f32 %v740_v15, %v667_v18 }
 0x245   :  { %v814_v23 = vpop.f32.mrb[8].mxu1 }
 0x246   :  { %v815_v24 = vadd.f32 %v814_v23, %v741_v22  ;;  %v2004_v25 = vpop.f32.mrb[9].mxu1  ;;  %v1046_v26 = vpop.f32.mrb[12].mxu0 }
 0x247   :  { %v2019_v27 = vpop.f32.mrb[13].mxu0 }
 0x248   :  { %v889_v29 = vadd.f32 %v888_v20, %v815_v24 }
 0x249   :  { %v960_v30 = vpop.f32.mrb[10].mxu1 }
 0x24a   :  { %v961_v31 = vadd.f32 %v960_v30, %v889_v29  ;;  %v2014_v32 = vpop.f32.mrb[11].mxu1  ;;  %v1196_v33 = vpop.f32.mrb[14].mxu0 }
 0x24b   :  { %v2029_v35 = vpop.f32.mrb[15].mxu0 }
 0x24d   :  { %v1122_v36 = vpop.f32.mrb[12].mxu1 }
 0x24e   :  { %v1123_v38 = vadd.f32 %v1122_v36, %v1046_v26  ;;  %v2024_v39 = vpop.f32.mrb[13].mxu1 }
 0x24f   :  { %v1344_v40 = vpop.f32.mrb[16].mxu0 }
 0x250   :  { %v1197_v41 = vadd.f32 %v1196_v33, %v1123_v38  ;;  %v2039_v42 = vpop.f32.mrb[17].mxu0 }
 0x251   :  { %v1270_v43 = vpop.f32.mrb[14].mxu1 }
 0x252   :  { %v1271_v45 = vadd.f32 %v1270_v43, %v1197_v41  ;;  %v2034_v46 = vpop.f32.mrb[15].mxu1 }
 0x254   :  { %v1345_v47 = vadd.f32 %v1344_v40, %v1271_v45 }
 0x255   :  { %v1416_v48 = vpop.f32.mrb[16].mxu1 }
 0x256   :  { %v1417_v50 = vadd.f32 %v1416_v48, %v1345_v47  ;;  %v2044_v51 = vpop.f32.mrb[17].mxu1 }
 0x258   :  { %v1420_v53 = vadd.f32 %v1417_v50, %v961_v31 }
 0x25a   :  { %v1427_v55 = vadd.f32 %v1425_v52, %v1420_v53 }
 0x25c   :  { %v1428_v56 = vmax.f32 %v1427_v55, 0.0 }
 0x25e   :  { %v1441_v58 = vand.u32 4294901760, %v1428_v56 }
 0x260   :  { %v1518_v59 = vsub.f32 %v1428_v56, %v1441_v58  ;;  %2046 = vmatpush3.msra.mxu0 %v1441_v58 }
 0x261   :  { %2048 = vmatmul.mubr.f32.vlgmr.msra.gmra.mrb[18].mxu0 %v1510_v57  ;;  %2055 = vmatprep.subr.mxu0 %v2113_v5 }
 0x262   :  { %v1519_v60 = vand.u32 4294901760, %v1518_v59  ;;  %2056 = vmatpush3.msra.mxu0 %v1518_v59  ;;  %2057 = vmatprep.mubr.msk.f32.mxu0 %vm2114_vm2, %v2113_v5 }
 0x263   :  { %2065 = vmatprep.subr.mxu0 %v2113_v5 }
 0x264   :  { %v1520_v61 = vsub.f32 %v1518_v59, %v1519_v60 }
 0x265   :  { %2058 = vmatmul.mubr.f32.vlgmr.msra.gmra.mrb[20].mxu0 %v1507_v44 }
 0x266   :  { %2066 = vmatpush3.msra.mxu0 %v1519_v60  ;;  %v1521_v62 = vand.u32 4294901760, %v1520_v61  ;;  %2067 = vmatprep.mubr.msk.f32.mxu0 %vm2114_vm2, %v2113_v5 }
 0x268   :  { %2051 = vmatpush3.msra.mxu1 %v1521_v62 }
 0x269   :  { %2053 = vmatmul.mubr.f32.vlgmr.msra.gmra.mrb[18].mxu1 %v1506_v37  ;;  %2060 = vmatprep.subr.mxu1 %v2113_v5 }
 0x26a   :  { %2061 = vmatpush3.msra.mxu1 %v1441_v58  ;;  %2062 = vmatprep.mubr.msk.f32.mxu1 %vm2114_vm2, %v2113_v5 }
 0x26b   :  { %2070 = vmatprep.subr.mxu1 %v2113_v5  ;;  %2068 = vmatmul.mubr.f32.vlgmr.msra.gmra.mrb[22].mxu0 %v1506_v37 }
 0x26d   :  { %2063 = vmatmul.mubr.f32.vlgmr.msra.gmra.mrb[20].mxu1 %v1508_v49 }
 0x26e   :  { %2071 = vmatpush3.msra.mxu1 %v1441_v58  ;;  %2072 = vmatprep.mubr.msk.f32.mxu1 %vm2114_vm2, %v2113_v5 }
 0x271   :  { %2073 = vmatmul.mubr.f32.vlgmr.msra.gmra.mrb[22].mxu1 %v1506_v37 }
 0x334   :  { %v1512_v63 = vpop.f32.mrb[18].mxu0 }
 0x335   :  { %v2049_v1 = vpop.f32.mrb[19].mxu0  ;;  %v1513_v4 = vadd.f32 %v1512_v63, %v1434_v2 }
 0x338   :  { %v1662_v3 = vpop.f32.mrb[20].mxu0 }
 0x339   :  { %v2059_v6 = vpop.f32.mrb[21].mxu0 }
 0x33c   :  { %v1588_v7 = vpop.f32.mrb[18].mxu1 }
 0x33d   :  { %v1589_v8 = vadd.f32 %v1588_v7, %v1513_v4  ;;  %v2054_v9 = vpop.f32.mrb[19].mxu1 }
 0x33e   :  { %v1810_v10 = vpop.f32.mrb[22].mxu0 }
 0x33f   :  { %v1663_v11 = vadd.f32 %v1662_v3, %v1589_v8  ;;  %v2069_v12 = vpop.f32.mrb[23].mxu0 }
 0x340   :  { %v1736_v13 = vpop.f32.mrb[20].mxu1 }
 0x341   :  { %v1737_v14 = vadd.f32 %v1736_v13, %v1663_v11  ;;  %v2064_v15 = vpop.f32.mrb[21].mxu1 }
 0x343   :  { %v1811_v16 = vadd.f32 %v1810_v10, %v1737_v14 }
 0x344   :  { %v1882_v17 = vpop.f32.mrb[22].mxu1 }
 0x345   :  { %v1883_v5 = vadd.f32 %v1882_v17, %v1811_v16  ;;  %v2074_v18 = vpop.f32.mrb[23].mxu1 }
 0x347   :  { %v1886_v19 = vadd.f32 %v1883_v5, %v2157_v0 }
 0x349   :  { %1888 = vst.msk [vmem:[#allocation2] sm:$0xf] %vm1887_vm5, %v1886_v19 }
 0x34a   :  { %2097 = shalt.err (!%p2094_p4)
}
 0x34b   :  { %s2098_s19 = scalar_lea.hbm %s2298_s6, 64 }
 0x34c   :  { %p2099_p5 = scmp.ne.s32.totalorder %s2298_s6, %s2098_s19  ;;  %p2102_p6 = scmp.lt.u32.totalorder %s2098_s19, %s2298_s6 }
 0x34e   :  { %p2104_p7 = pnand %p2102_p6, %p2099_p5 }
 0x350   :  { %2107 = shalt.err (!%p2104_p7)
}
 0x351   :  { %1898 = dma.vmem_to_hbm [thread:$0]  %s1896_s15, 64, %s2298_s6, [#allocation3]  }
 0x352   :  { %2108 = dma.done.wait [#allocation3], 64  }
 0x353   :  { %2109 = vsyncadd [#allocation3], 4294967232 }
 0x354   :  { %1902 = vsyncpa [#allocation3], 1 }

</bundles_post_ra>
